<compile_context>
chip_gen: v7x
topology: tpu7x:2x2x1
jax: 0.10.0
libtpu: 0.0.40
codegen_flags: <defaults>
</compile_context>

<pallas_src>
import functools
import math
from typing import NamedTuple

import jax
import jax.numpy as jnp
from jax.experimental import pallas as pl
from jax.experimental.pallas import tpu as pltpu

LANE = 128
SUBLANE_BF16 = 16


def _round_up(x, m):
    return (x + m - 1) // m * m


class Meta(NamedTuple):
    n: int        # real node count
    o: int        # real output width
    f_in: int     # input feature width
    hp: int       # padded hidden width (multiple of 128)
    op: int       # padded output width (multiple of 128)
    tile_n: int   # row tile ("parallel" axis)
    tile_k: int   # K tile over A_norm @ X ("arbitrary" axis)
    n_pad: int    # padded node count (divisible by tile_n and tile_k)


# --------------------------------------------------------------------------
# Kernel
# --------------------------------------------------------------------------
def tgcn_kernel(a_ref, x_ref, wg_ref, wgates_ref, bias_ref, wfc_ref, bfc_ref,
                o_ref, ax_ref, *, hp):
    """One (row-tile, k-tile) grid step."""
    k = pl.program_id(1)

    @pl.when(k == 0)
    def _():
        ax_ref[...] = jnp.zeros_like(ax_ref)

    # ---- partial A_norm @ X for this (row, k) tile (bf16 in, f32 acc) ----
    ax_ref[...] += jnp.dot(a_ref[...], x_ref[...],
                           preferred_element_type=jnp.float32)

    @pl.when(k == pl.num_programs(1) - 1)
    def _():
        bias = bias_ref[...]                       # (8, hp) f32, one load

        # ---- GCNConv + ReLU: relu( (A @ X) @ Wg + bg ) ----
        ax = ax_ref[...].astype(wg_ref.dtype)
        g = jnp.maximum(
            jnp.dot(ax, wg_ref[...], preferred_element_type=jnp.float32)
            + bias[0:1, :], 0.0)

        # ---- GRU, single step, h0 = 0 (PyTorch gate order: r, z, n) ----
        gates = jnp.dot(g.astype(wgates_ref.dtype), wgates_ref[...],
                        preferred_element_type=jnp.float32)
        r = jax.nn.sigmoid(gates[:, 0:hp] + bias[1:2, :])        # bir + bhr
        z = jax.nn.sigmoid(gates[:, hp:2 * hp] + bias[2:3, :])   # biz + bhz
        n = jnp.tanh(gates[:, 2 * hp:3 * hp] + bias[3:4, :]      # bin
                     + r * bias[4:5, :])                         # r * bhn
        h = (1.0 - z) * n                                        # + z*h0 (=0)

        # ---- Final Linear (lane-dense padded output columns) ----
        o_ref[...] = (jnp.dot(h.astype(wfc_ref.dtype), wfc_ref[...],
                              preferred_element_type=jnp.float32)
                      + bfc_ref[...]).astype(o_ref.dtype)


# --------------------------------------------------------------------------
# Host-side tiling / packing (call once) and the pallas_call wrapper
# --------------------------------------------------------------------------
def _select_tiles(n, tile_n=None, tile_k=None):
    if tile_n is None:
        if n <= 128:
            tile_n = n                      # single row tile
        elif n <= 256:
            tile_n = (n + 1) // 2           # >=2 row tiles: feed both v7x TCs
        else:
            tile_n = 256                    # v6e could use 512; v7x prefers <=256
    tile_n = max(_round_up(tile_n, SUBLANE_BF16), SUBLANE_BF16)
    n_pad = _round_up(n, tile_n)
    if tile_k is None:
        tile_k = n_pad if n_pad <= 1024 else 512
    tile_k = max(_round_up(tile_k, SUBLANE_BF16), SUBLANE_BF16)
    lcm = tile_n * tile_k // math.gcd(tile_n, tile_k)
    n_pad = _round_up(n, lcm)
    return tile_n, tile_k, n_pad


def _estimate_vmem_bytes(m: Meta):
    def t(rows, cols, itemsize, sub):
        return _round_up(max(rows, 1), sub) * _round_up(max(cols, 1), LANE) * itemsize

    b = 0
    b += 2 * t(m.tile_n, m.tile_k, 2, 16)      # A tile (bf16, double-buffered)
    b += 2 * t(m.tile_k, m.f_in, 2, 16)        # X k-tile
    b += 2 * t(m.f_in, m.hp, 2, 16)            # wg
    b += 2 * t(m.hp, 3 * m.hp, 2, 16)          # fused GRU gate weights
    b += 2 * t(8, m.hp, 4, 8)                  # packed biases (f32)
    b += 2 * t(m.hp, m.op, 2, 16)              # wfc
    b += 2 * t(1, m.op, 4, 8)                  # bfc
    b += 2 * t(m.tile_n, m.op, 4, 8)           # output tile (f32)
    b += t(m.tile_n, m.f_in, 4, 8)             # A@X accumulator scratch
    b += 4 * t(m.tile_n, 3 * m.hp, 4, 8)       # epilogue intermediates headroom
    return b


def _vmem_limit_bytes(m: Meta):
    est = _estimate_vmem_bytes(m)
    return int(min(64 << 20, max(16 << 20, 2 * est + (4 << 20))))


def prepare_tgcn_inputs(a_norm, x, params, *, tile_n=None, tile_k=None,
                        compute_dtype=jnp.bfloat16):
    """One-time host packing: pad to lane-dense shapes, fuse GRU gate weights,
    pre-sum biases (h0 == 0), cast the big operands to `compute_dtype`."""
    n, f_in = x.shape
    h = params["wg"].shape[1]
    o = params["wfc"].shape[1]
    hp = _round_up(h, LANE)
    op = _round_up(o, LANE)
    tile_n, tile_k, n_pad = _select_tiles(n, tile_n, tile_k)
    meta = Meta(n=n, o=o, f_in=f_in, hp=hp, op=op,
                tile_n=tile_n, tile_k=tile_k, n_pad=n_pad)

    f32 = jnp.float32
    a_p = jnp.zeros((n_pad, n_pad), f32).at[:n, :n].set(a_norm).astype(compute_dtype)
    x_p = jnp.zeros((n_pad, f_in), f32).at[:n, :].set(x).astype(compute_dtype)

    wg_p = jnp.zeros((f_in, hp), f32).at[:, :h].set(params["wg"]).astype(compute_dtype)
    wgates_p = jnp.zeros((hp, 3 * hp), f32)
    wgates_p = wgates_p.at[:h, 0 * hp:0 * hp + h].set(params["wir"])
    wgates_p = wgates_p.at[:h, 1 * hp:1 * hp + h].set(params["wiz"])
    wgates_p = wgates_p.at[:h, 2 * hp:2 * hp + h].set(params["win"])
    wgates_p = wgates_p.astype(compute_dtype)
    wfc_p = jnp.zeros((hp, op), f32).at[:h, :o].set(params["wfc"]).astype(compute_dtype)

    # Biases stay f32 (tiny traffic; keeps the elementwise epilogue precise).
    bias_p = jnp.zeros((8, hp), f32)
    bias_p = bias_p.at[0, :h].set(params["bg"][0])
    bias_p = bias_p.at[1, :h].set(params["bir"][0] + params["bhr"][0])
    bias_p = bias_p.at[2, :h].set(params["biz"][0] + params["bhz"][0])
    bias_p = bias_p.at[3, :h].set(params["bin"][0])
    bias_p = bias_p.at[4, :h].set(params["bhn"][0])
    bfc_p = jnp.zeros((1, op), f32).at[0, :o].set(params["bfc"][0])

    packed = (a_p, x_p, wg_p, wgates_p, bias_p, wfc_p, bfc_p)
    return packed, meta


def tgcn_forward_packed(a_p, x_p, wg_p, wgates_p, bias_p, wfc_p, bfc_p, *, meta):
    m = meta
    grid = (m.n_pad // m.tile_n, m.n_pad // m.tile_k)

    # Grid-invariant operands: block index never changes so they are not
    # re-DMAed across grid steps.
    # TODO(synk): single-buffer these via pipeline_mode=pl.Buffered(1) once
    # confirmed supported on the target jax build (saves their 2x VMEM copy).
    def invariant(shape):
        return pl.BlockSpec(shape, lambda i, k: (0, 0))

    in_specs = [
        pl.BlockSpec((m.tile_n, m.tile_k), lambda i, k: (i, k)),   # A row/K tile
        pl.BlockSpec((m.tile_k, m.f_in), lambda i, k: (k, 0)),     # X K tile
        invariant((m.f_in, m.hp)),                                 # GCN weight
        invariant((m.hp, 3 * m.hp)),                               # fused GRU weights
        invariant((8, m.hp)),                                      # packed biases
        invariant((m.hp, m.op)),                                   # fc weight
        invariant((1, m.op)),                                      # fc bias
    ]
    out_specs = pl.BlockSpec((m.tile_n, m.op), lambda i, k: (i, 0))

    out_p = pl.pallas_call(
        functools.partial(tgcn_kernel, hp=m.hp),
        out_shape=jax.ShapeDtypeStruct((m.n_pad, m.op), jnp.float32),
        grid_spec=pltpu.PrefetchScalarGridSpec(
            num_scalar_prefetch=0,
            grid=grid,
            in_specs=in_specs,
            out_specs=out_specs,
            scratch_shapes=[pltpu.VMEM((m.tile_n, m.f_in), jnp.float32)],
        ),
        compiler_params=pltpu.CompilerParams(
            dimension_semantics=("parallel", "arbitrary"),
            vmem_limit_bytes=_vmem_limit_bytes(m),
        ),
    )(a_p, x_p, wg_p, wgates_p, bias_p, wfc_p, bfc_p)

    return out_p[:m.n, :m.o]


def tgcn_forward(a_norm, x, params, **kw):
    """Convenience one-shot API.  For repeated calls, prepare once and reuse a
    jitted `tgcn_forward_packed` (padding/packing is hoisted out of the hot
    path)."""
    packed, meta = prepare_tgcn_inputs(a_norm, x, params, **kw)
    return tgcn_forward_packed(*packed, meta=meta)


# --------------------------------------------------------------------------
# Glue, reference, params
# --------------------------------------------------------------------------
def build_norm_adj(edge_index, num_nodes):
    """Dense GCN-normalized adjacency  D^-1/2 (A + I) D^-1/2."""
    src, dst = edge_index[0], edge_index[1]
    a = jnp.zeros((num_nodes, num_nodes), jnp.float32).at[dst, src].set(1.0)
    a = a + jnp.eye(num_nodes, dtype=jnp.float32)
    deg = jnp.sum(a, axis=1)
    dinv = jnp.where(deg > 0, 1.0 / jnp.sqrt(deg), 0.0)
    return dinv[:, None] * a * dinv[None, :]


def tgcn_reference(a_norm, x, p):
    """Plain-JAX f32 reference for validation."""
    g = jnp.maximum(a_norm @ x @ p["wg"] + p["bg"], 0.0)
    r = jax.nn.sigmoid(g @ p["wir"] + p["bir"] + p["bhr"])
    z = jax.nn.sigmoid(g @ p["wiz"] + p["biz"] + p["bhz"])
    n = jnp.tanh(g @ p["win"] + p["bin"] + r * p["bhn"])
    h = (1.0 - z) * n
    return h @ p["wfc"] + p["bfc"]


def init_params(key, input_dim, hidden_dim, output_dim):
    ks = jax.random.split(key, 16)

    def u(k, shape, scale):
        return jax.random.uniform(k, shape, jnp.float32, -scale, scale)

    sg = 1.0 / jnp.sqrt(input_dim)
    sh = 1.0 / jnp.sqrt(hidden_dim)
    return {
        # GCNConv
        "wg": u(ks[0], (input_dim, hidden_dim), sg),
        "bg": u(ks[1], (1, hidden_dim), sg),
        # GRU input->hidden (r, z, n) and biases
        "wir": u(ks[2], (hidden_dim, hidden_dim), sh),
        "wiz": u(ks[3], (hidden_dim, hidden_dim), sh),
        "win": u(ks[4], (hidden_dim, hidden_dim), sh),
        "bir": u(ks[5], (1, hidden_dim), sh),
        "biz": u(ks[6], (1, hidden_dim), sh),
        "bin": u(ks[7], (1, hidden_dim), sh),
        # GRU hidden->hidden biases (hidden->hidden weights multiply h0 == 0)
        "bhr": u(ks[8], (1, hidden_dim), sh),
        "bhz": u(ks[9], (1, hidden_dim), sh),
        "bhn": u(ks[10], (1, hidden_dim), sh),
        # fc
        "wfc": u(ks[11], (hidden_dim, output_dim), sh),
        "bfc": u(ks[12], (1, output_dim), sh),
    }


if __name__ == "__main__":
    N, INPUT_DIM, HIDDEN_DIM, OUTPUT_DIM = 32, 8, 32, 4

    key = jax.random.PRNGKey(0)
    kx, kp = jax.random.split(key)

    # node features
    x = jax.random.normal(kx, (N, INPUT_DIM), jnp.float32)

    # deterministic bidirectional ring graph as edge_index (2, E)
    idx = jnp.arange(N)
    src = jnp.concatenate([idx, (idx + 1) % N])
    dst = jnp.concatenate([(idx + 1) % N, idx])
    edge_index = jnp.stack([src, dst], axis=0)

    a_norm = build_norm_adj(edge_index, N)
    params = init_params(kp, INPUT_DIM, HIDDEN_DIM, OUTPUT_DIM)

    # Host-side padding/packing done ONCE, outside the per-call path.
    packed, meta = prepare_tgcn_inputs(a_norm, x, params)
    fwd = jax.jit(functools.partial(tgcn_forward_packed, meta=meta))

    out = jax.block_until_ready(fwd(*packed))

    ref = tgcn_reference(a_norm, x, params)
    assert out.shape == (N, OUTPUT_DIM)
    # bf16 matmul operands (f32 accumulation) -> looser tolerance vs f32 ref.
    assert jnp.allclose(out, ref, atol=5e-2, rtol=5e-2), "mismatch vs reference"

    print("KERNEL_OK")
</pallas_src>

<mosaic_0001>
module attributes {stable_mosaic.version = 11 : i64} {
  func.func @tgcn_kernel(%arg0: i32, %arg1: i32, %arg2: memref<32x32xbf16, #tpu.memory_space<vmem>>, %arg3: memref<32x8xbf16, #tpu.memory_space<vmem>>, %arg4: memref<8x128xbf16, #tpu.memory_space<vmem>>, %arg5: memref<128x384xbf16, #tpu.memory_space<vmem>>, %arg6: memref<8x128xf32, #tpu.memory_space<vmem>>, %arg7: memref<128x128xbf16, #tpu.memory_space<vmem>>, %arg8: memref<1x128xf32, #tpu.memory_space<vmem>>, %arg9: memref<32x128xf32, #tpu.memory_space<vmem>>, %arg10: memref<32x8xf32, #tpu.memory_space<vmem>>) attributes {dimension_semantics = [#tpu.dimension_semantics<parallel>, #tpu.dimension_semantics<arbitrary>], iteration_bounds = array<i64: 1, 1>, scalar_prefetch = 0 : i64, scratch_operands = 1 : i64, tpu.core_type = #tpu.core_type<tc>, window_params = [{transform_indices = @transform_0, window_bounds = array<i64: 32, 32>}, {transform_indices = @transform_1, window_bounds = array<i64: 32, 8>}, {pipeline_mode = #tpu.pipeline_mode<synchronous>, transform_indices = @transform_2, window_bounds = array<i64: 8, 128>}, {pipeline_mode = #tpu.pipeline_mode<synchronous>, transform_indices = @transform_3, window_bounds = array<i64: 128, 384>}, {pipeline_mode = #tpu.pipeline_mode<synchronous>, transform_indices = @transform_4, window_bounds = array<i64: 8, 128>}, {pipeline_mode = #tpu.pipeline_mode<synchronous>, transform_indices = @transform_5, window_bounds = array<i64: 128, 128>}, {pipeline_mode = #tpu.pipeline_mode<synchronous>, transform_indices = @transform_6, window_bounds = array<i64: 1, 128>}, {transform_indices = @transform_7, window_bounds = array<i64: 32, 128>}]} {
    %c0_i32 = arith.constant 0 : i32
    %0 = arith.cmpi eq, %arg1, %c0_i32 : i32
    %1 = arith.extui %0 : i1 to i32
    %c0_i32_0 = arith.constant 0 : i32
    %2 = arith.cmpi ne, %1, %c0_i32_0 : i32
    scf.if %2 {
      %cst_10 = arith.constant 0.000000e+00 : f32
      %12 = vector.broadcast %cst_10 : f32 to vector<32x8xf32>
      %c0_11 = arith.constant 0 : index
      %c0_12 = arith.constant 0 : index
      %13 = vector.load %arg10[%c0_11, %c0_12] : memref<32x8xf32, #tpu.memory_space<vmem>>, vector<32x8xf32>
      tpu.vector_store %arg10[%c0_11, %c0_12], %12 {strides = array<i32>} : memref<32x8xf32, #tpu.memory_space<vmem>>, vector<32x8xf32>,
    } else {
    }
    %c0 = arith.constant 0 : index
    %c0_1 = arith.constant 0 : index
    %3 = vector.load %arg10[%c0, %c0_1] : memref<32x8xf32, #tpu.memory_space<vmem>>, vector<32x8xf32>
    %c0_2 = arith.constant 0 : index
    %c0_3 = arith.constant 0 : index
    %4 = vector.load %arg2[%c0_2, %c0_3] : memref<32x32xbf16, #tpu.memory_space<vmem>>, vector<32x32xbf16>
    %c0_4 = arith.constant 0 : index
    %c0_5 = arith.constant 0 : index
    %5 = vector.load %arg3[%c0_4, %c0_5] : memref<32x8xbf16, #tpu.memory_space<vmem>>, vector<32x8xbf16>
    %cst = arith.constant dense<0.000000e+00> : vector<32x8xf32>
    %6 = tpu.matmul %4, %5, %cst {dimension_numbers = #tpu.dot_dimension_numbers<[1], [0], [0], [1], [0, 0, 1, 1], [], []>} : vector<32x32xbf16>, vector<32x8xbf16>, vector<32x8xf32> -> vector<32x8xf32>
    %7 = arith.addf %3, %6 : vector<32x8xf32>
    %c0_6 = arith.constant 0 : index
    %c0_7 = arith.constant 0 : index
    %8 = vector.load %arg10[%c0_6, %c0_7] : memref<32x8xf32, #tpu.memory_space<vmem>>, vector<32x8xf32>
    tpu.vector_store %arg10[%c0_6, %c0_7], %7 {strides = array<i32>} : memref<32x8xf32, #tpu.memory_space<vmem>>, vector<32x8xf32>,
    %c0_i32_8 = arith.constant 0 : i32
    %9 = arith.cmpi eq, %arg1, %c0_i32_8 : i32
    %10 = arith.extui %9 : i1 to i32
    %c0_i32_9 = arith.constant 0 : i32
    %11 = arith.cmpi ne, %10, %c0_i32_9 : i32
    scf.if %11 {
      %c0_10 = arith.constant 0 : index
      %c0_11 = arith.constant 0 : index
      %12 = vector.load %arg6[%c0_10, %c0_11] : memref<8x128xf32, #tpu.memory_space<vmem>>, vector<8x128xf32>
      %c0_12 = arith.constant 0 : index
      %c0_13 = arith.constant 0 : index
      %13 = vector.load %arg10[%c0_12, %c0_13] : memref<32x8xf32, #tpu.memory_space<vmem>>, vector<32x8xf32>
      %14 = arith.truncf %13 : vector<32x8xf32> to vector<32x8xbf16>
      %c0_14 = arith.constant 0 : index
      %c0_15 = arith.constant 0 : index
      %15 = vector.load %arg4[%c0_14, %c0_15] : memref<8x128xbf16, #tpu.memory_space<vmem>>, vector<8x128xbf16>
      %cst_16 = arith.constant dense<0.000000e+00> : vector<32x128xf32>
      %16 = tpu.matmul %14, %15, %cst_16 {dimension_numbers = #tpu.dot_dimension_numbers<[1], [0], [0], [1], [0, 0, 1, 1], [], []>} : vector<32x8xbf16>, vector<8x128xbf16>, vector<32x128xf32> -> vector<32x128xf32>
      %17 = vector.extract_strided_slice %12 {offsets = [0, 0], sizes = [1, 128], strides = [1, 1]} : vector<8x128xf32> to vector<1x128xf32>
      %18 = vector.broadcast %17 : vector<1x128xf32> to vector<32x128xf32>
      %19 = arith.addf %16, %18 : vector<32x128xf32>
      %cst_17 = arith.constant 0.000000e+00 : f32
      %20 = vector.broadcast %cst_17 : f32 to vector<32x128xf32>
      %21 = arith.maximumf %19, %20 : vector<32x128xf32>
      %22 = arith.truncf %21 : vector<32x128xf32> to vector<32x128xbf16>
      %c0_18 = arith.constant 0 : index
      %c0_19 = arith.constant 0 : index
      %23 = vector.load %arg5[%c0_18, %c0_19] : memref<128x384xbf16, #tpu.memory_space<vmem>>, vector<128x384xbf16>
      %cst_20 = arith.constant dense<0.000000e+00> : vector<32x384xf32>
      %24 = tpu.matmul %22, %23, %cst_20 {dimension_numbers = #tpu.dot_dimension_numbers<[1], [0], [0], [1], [0, 0, 1, 1], [], []>} : vector<32x128xbf16>, vector<128x384xbf16>, vector<32x384xf32> -> vector<32x384xf32>
      %25 = vector.extract_strided_slice %24 {offsets = [0, 0], sizes = [32, 128], strides = [1, 1]} : vector<32x384xf32> to vector<32x128xf32>
      %26 = vector.extract_strided_slice %12 {offsets = [1, 0], sizes = [1, 128], strides = [1, 1]} : vector<8x128xf32> to vector<1x128xf32>
      %27 = vector.broadcast %26 : vector<1x128xf32> to vector<32x128xf32>
      %28 = arith.addf %25, %27 : vector<32x128xf32>
      %29 = arith.negf %28 : vector<32x128xf32>
      %30 = math.exp %29 : vector<32x128xf32>
      %cst_21 = arith.constant 1.000000e+00 : f32
      %31 = vector.broadcast %cst_21 : f32 to vector<32x128xf32>
      %32 = arith.addf %31, %30 : vector<32x128xf32>
      %33 = arith.divf %31, %32 : vector<32x128xf32>
      %34 = vector.extract_strided_slice %24 {offsets = [0, 128], sizes = [32, 128], strides = [1, 1]} : vector<32x384xf32> to vector<32x128xf32>
      %35 = vector.extract_strided_slice %12 {offsets = [2, 0], sizes = [1, 128], strides = [1, 1]} : vector<8x128xf32> to vector<1x128xf32>
      %36 = vector.broadcast %35 : vector<1x128xf32> to vector<32x128xf32>
      %37 = arith.addf %34, %36 : vector<32x128xf32>
      %38 = arith.negf %37 : vector<32x128xf32>
      %39 = math.exp %38 : vector<32x128xf32>
      %cst_22 = arith.constant 1.000000e+00 : f32
      %40 = vector.broadcast %cst_22 : f32 to vector<32x128xf32>
      %41 = arith.addf %40, %39 : vector<32x128xf32>
      %42 = arith.divf %40, %41 : vector<32x128xf32>
      %43 = vector.extract_strided_slice %24 {offsets = [0, 256], sizes = [32, 128], strides = [1, 1]} : vector<32x384xf32> to vector<32x128xf32>
      %44 = vector.extract_strided_slice %12 {offsets = [3, 0], sizes = [1, 128], strides = [1, 1]} : vector<8x128xf32> to vector<1x128xf32>
      %45 = vector.broadcast %44 : vector<1x128xf32> to vector<32x128xf32>
      %46 = arith.addf %43, %45 : vector<32x128xf32>
      %47 = vector.extract_strided_slice %12 {offsets = [4, 0], sizes = [1, 128], strides = [1, 1]} : vector<8x128xf32> to vector<1x128xf32>
      %48 = vector.broadcast %47 : vector<1x128xf32> to vector<32x128xf32>
      %49 = arith.mulf %33, %48 : vector<32x128xf32>
      %50 = arith.addf %46, %49 : vector<32x128xf32>
      %51 = math.tanh %50 : vector<32x128xf32>
      %cst_23 = arith.constant 1.000000e+00 : f32
      %52 = vector.broadcast %cst_23 : f32 to vector<32x128xf32>
      %53 = arith.subf %52, %42 : vector<32x128xf32>
      %54 = arith.mulf %53, %51 : vector<32x128xf32>
      %55 = arith.truncf %54 : vector<32x128xf32> to vector<32x128xbf16>
      %c0_24 = arith.constant 0 : index
      %c0_25 = arith.constant 0 : index
      %56 = vector.load %arg7[%c0_24, %c0_25] : memref<128x128xbf16, #tpu.memory_space<vmem>>, vector<128x128xbf16>
      %cst_26 = arith.constant dense<0.000000e+00> : vector<32x128xf32>
      %57 = tpu.matmul %55, %56, %cst_26 {dimension_numbers = #tpu.dot_dimension_numbers<[1], [0], [0], [1], [0, 0, 1, 1], [], []>} : vector<32x128xbf16>, vector<128x128xbf16>, vector<32x128xf32> -> vector<32x128xf32>
      %c0_27 = arith.constant 0 : index
      %c0_28 = arith.constant 0 : index
      %58 = vector.load %arg8[%c0_27, %c0_28] : memref<1x128xf32, #tpu.memory_space<vmem>>, vector<1x128xf32>
      %59 = vector.broadcast %58 : vector<1x128xf32> to vector<32x128xf32>
      %60 = arith.addf %57, %59 : vector<32x128xf32>
      %c0_29 = arith.constant 0 : index
      %c0_30 = arith.constant 0 : index
      %61 = vector.load %arg9[%c0_29, %c0_30] : memref<32x128xf32, #tpu.memory_space<vmem>>, vector<32x128xf32>
      tpu.vector_store %arg9[%c0_29, %c0_30], %60 {strides = array<i32>} : memref<32x128xf32, #tpu.memory_space<vmem>>, vector<32x128xf32>,
    } else {
    }
    return
  }
  func.func @transform_0(%arg0: i32, %arg1: i32) -> (i32, i32) {
    %c0_i32 = arith.constant 0 : i32
    return %arg0, %arg1 : i32, i32
  }
  func.func @transform_1(%arg0: i32, %arg1: i32) -> (i32, i32) {
    %c0_i32 = arith.constant 0 : i32
    %c0_i32_0 = arith.constant 0 : i32
    return %arg1, %c0_i32 : i32, i32
  }
  func.func @transform_2(%arg0: i32, %arg1: i32) -> (i32, i32) {
    %c0_i32 = arith.constant 0 : i32
    %c0_i32_0 = arith.constant 0 : i32
    %c0_i32_1 = arith.constant 0 : i32
    return %c0_i32, %c0_i32_0 : i32, i32
  }
  func.func @transform_3(%arg0: i32, %arg1: i32) -> (i32, i32) {
    %c0_i32 = arith.constant 0 : i32
    %c0_i32_0 = arith.constant 0 : i32
    %c0_i32_1 = arith.constant 0 : i32
    return %c0_i32, %c0_i32_0 : i32, i32
  }
  func.func @transform_4(%arg0: i32, %arg1: i32) -> (i32, i32) {
    %c0_i32 = arith.constant 0 : i32
    %c0_i32_0 = arith.constant 0 : i32
    %c0_i32_1 = arith.constant 0 : i32
    return %c0_i32, %c0_i32_0 : i32, i32
  }
  func.func @transform_5(%arg0: i32, %arg1: i32) -> (i32, i32) {
    %c0_i32 = arith.constant 0 : i32
    %c0_i32_0 = arith.constant 0 : i32
    %c0_i32_1 = arith.constant 0 : i32
    return %c0_i32, %c0_i32_0 : i32, i32
  }
  func.func @transform_6(%arg0: i32, %arg1: i32) -> (i32, i32) {
    %c0_i32 = arith.constant 0 : i32
    %c0_i32_0 = arith.constant 0 : i32
    %c0_i32_1 = arith.constant 0 : i32
    return %c0_i32, %c0_i32_0 : i32, i32
  }
  func.func @transform_7(%arg0: i32, %arg1: i32) -> (i32, i32) {
    %c0_i32 = arith.constant 0 : i32
    %c0_i32_0 = arith.constant 0 : i32
    return %arg0, %c0_i32 : i32, i32
  }
}

</mosaic_0001>

<bundles_post_ra>
// kernel: tgcn_forward_packed.1
= control target key start
LH: loop header
LB: loop body
LE: loop exit
PB: predicated region body
PF: predicated region fallthrough
CT: control target
= control target key end

     0   :  { %12 = vsyncpa [#allocation4], 0  ;;  %s1183_s0 = inlined_call_operand.vmem [shape: bf16[32,32], index: 0, kind: input, shape index: {}]   ;;  %s1184_s1 = inlined_call_operand.vmem [shape: bf16[32,8], index: 1, kind: input, shape index: {}]   ;;  %s1185_s2 = inlined_call_operand.hbm [shape: bf16[8,128], index: 2, kind: input, shape index: {}]   ;;  %s1186_s3 = inlined_call_operand.hbm [shape: bf16[128,384], index: 3, kind: input, shape index: {}]   ;;  %s1187_s4 = inlined_call_operand.vmem [shape: f32[8,128], index: 4, kind: input, shape index: {}]   ;;  %s1188_s5 = inlined_call_operand.hbm [shape: bf16[128,128], index: 5, kind: input, shape index: {}]   ;;  %s1189_s6 = inlined_call_operand.vmem [shape: f32[1,128], index: 6, kind: input, shape index: {}]   ;;  %s1190_s7 = inlined_call_operand.vmem [shape: f32[32,128], index: 7, kind: output, shape index: {}]  }
   0x1   :  { %13 = vsyncpa [#allocation6], 0  ;;  %s1038_s24 = smov [#allocation5]   ;;  %s968_s28 = scalar_lea.hbm %s1186_s3, 3072 }
   0x2   :  { %s33_s25 = sshll.u32 %s1038_s24, 4  ;;  %p969_p0 = scmp.ne.s32.totalorder %s1186_s3, %s968_s28  ;;  %s34_s25 = int_to_ptr.vmem [resolvable:$true] %s33_s25 }
   0x3   :  { %p972_p1 = scmp.lt.u32.totalorder %s968_s28, %s1186_s3 }
   0x5   :  { %p974_p2 = pnand %p972_p1, %p969_p0 }
   0x7   :  { %977 = shalt.err (!%p974_p2)
}
   0x8   :  { %s978_s10 = scalar_lea.vmem %s34_s25, 3072  ;;  %p983_p4 = scmp.lt.s32.totalorder %s34_s25, %s34_s25 }
   0x9   :  { %p979_p3 = scmp.ne.s32.totalorder %s34_s25, %s978_s10  ;;  %p984_p5 = scmp.lt.s32.totalorder %s978_s10, %s978_s10 }
   0xb   :  { %p985_p6 = por %p984_p5, %p983_p4 }
   0xd   :  { %p986_p7 = pnand %p985_p6, %p979_p3 }
   0xf   :  { %989 = shalt.err (!%p986_p7)
}
  0x10   :  { %s1039_s11 = smov 192   ;;  %s1040_s12 = smov 12  }
  0x11   :  { %39 = dma.hbm_to_vmem [thread:$0]  %s1186_s3, 3072, %s34_s25, [#allocation6], %s1039_s11, %s1039_s11, %s1040_s12  }
  0x12   :  { %s1041_s15 = smov [#allocation3]   ;;  %s1042_s17 = smov [#allocation7]  }
  0x13   :  { %s24_s16 = sshll.u32 %s1041_s15, 4  ;;  %s47_s18 = sshll.u32 %s1042_s17, 4  ;;  %s25_s16 = int_to_ptr.vmem [resolvable:$true] %s24_s16  ;;  %s48_s18 = int_to_ptr.vmem [resolvable:$true] %s47_s18 }
  0x14   :  { %s990_s21 = scalar_lea.hbm %s1185_s2, 64 }
  0x15   :  { %p991_p8 = scmp.ne.s32.totalorder %s1185_s2, %s990_s21  ;;  %p994_p9 = scmp.lt.u32.totalorder %s990_s21, %s1185_s2 }
  0x17   :  { %p996_p10 = pnand %p994_p9, %p991_p8 }
  0x19   :  { %999 = shalt.err (!%p996_p10)
}
  0x1a   :  { %s1000_s3 = scalar_lea.vmem %s25_s16, 64  ;;  %p1005_p12 = scmp.lt.s32.totalorder %s25_s16, %s25_s16 }
  0x1b   :  { %p1001_p11 = scmp.ne.s32.totalorder %s25_s16, %s1000_s3  ;;  %p1006_p13 = scmp.lt.s32.totalorder %s1000_s3, %s1000_s3 }
  0x1d   :  { %p1007_p0 = por %p1006_p13, %p1005_p12 }
  0x1f   :  { %p1008_p1 = pnand %p1007_p0, %p1001_p11 }
  0x21   :  { %1011 = shalt.err (!%p1008_p1)
}
  0x22   :  { %27 = dma.hbm_to_vmem [thread:$0]  %s1185_s2, 64, %s25_s16, [#allocation4]  }
  0x23   :  { %s1012_s30 = scalar_lea.hbm %s1188_s5, 1024 }
  0x24   :  { %p1013_p2 = scmp.ne.s32.totalorder %s1188_s5, %s1012_s30  ;;  %p1016_p3 = scmp.lt.u32.totalorder %s1012_s30, %s1188_s5 }
  0x26   :  { %p1018_p4 = pnand %p1016_p3, %p1013_p2 }
  0x28   :  { %1021 = shalt.err (!%p1018_p4)
}
  0x29   :  { %s1022_s12 = scalar_lea.vmem %s48_s18, 1024  ;;  %p1027_p6 = scmp.lt.s32.totalorder %s48_s18, %s48_s18 }
  0x2a   :  { %p1023_p5 = scmp.ne.s32.totalorder %s48_s18, %s1022_s12  ;;  %p1028_p7 = scmp.lt.s32.totalorder %s1022_s12, %s1022_s12 }
  0x2c   :  { %p1029_p8 = por %p1028_p7, %p1027_p6 }
  0x2e   :  { %p1030_p9 = pnand %p1029_p8, %p1023_p5 }
  0x30   :  { %1033 = shalt.err (!%p1030_p9)
}
  0x31   :  { %s1043_s2 = smov 64   ;;  %s1044_s13 = smov 4  }
  0x32   :  { %53 = dma.hbm_to_vmem [thread:$0]  %s1188_s5, 1024, %s48_s18, [#allocation6], %s1043_s2, %s1043_s2, %s1044_s13  }
  0x33   :  { %1034 = dma.done.wait [#allocation4], 64  }
  0x34   :  { %1035 = vsyncadd [#allocation4], 4294967232 }
  0x35   :  { %1036 = dma.done.wait [#allocation6], 4096  }
  0x36   :  { %1037 = vsyncadd [#allocation6], 4294963200  ;;  %vm70_vm0 = vcmask 64512   ;;  %v1045_v0 = vmov 0.0   ;;  %v884_v1 = vld [vmem:[%s1184_s1] sm:$0xff]   ;;  %v885_v2 = vld [vmem:[%s1184_s1 + $0x8] sm:$0xff]   ;;  %v185_v50 = vlaneseq }
  0x37   :  { %73 = vst.msk [vmem:[#allocation2 + $0x10] sm:$0xff] %vm70_vm0, %v1045_v0  ;;  %71 = vst.msk [vmem:[#allocation2] sm:$0xff] %vm70_vm0, %v1045_v0  ;;  %vm109_vm1 = vcmask 261120   ;;  %820 = vmatprep.subr.bf16.mxu0 %v884_v1  ;;  %v886_v3 = vld [vmem:[%s1183_s0] sm:$0xff]   ;;  %v887_v4 = vld [vmem:[%s1183_s0 + $0x8] sm:$0xff]   ;;  %vm195_vm2 = vcmask 1043456  }
  0x38   :  { %72 = vst.msk [vmem:[#allocation2 + $0x8] sm:$0xff] %vm70_vm0, %v1045_v0  ;;  %74 = vst.msk [vmem:[#allocation2 + $0x18] sm:$0xff] %vm70_vm0, %v1045_v0  ;;  %821 = vmatpush3.bf16.msra.mxu0 %v884_v1  ;;  %824 = vmatprep.mubr.msk.bf16.mxu0 %vm109_vm1, %v886_v3  ;;  %v184_v5 = vld [vmem:[#allocation3] sm:$0xf]  ;;  %v888_v7 = vld [vmem:[#allocation5 + $0x4] ss:$12 sps:$4 sm:$0xff]  }
  0x39   :  { %822 = vmatprep.subr.bf16.mxu0 %v885_v2  ;;  %v197_v6 = vsel %vm195_vm2, %v184_v5, 0  ;;  %v890_v8 = vld [vmem:[#allocation5] ss:$12 sps:$4 sm:$0xff]   ;;  %v891_v9 = vld [vmem:[#allocation5 + $0x8] ss:$12 sps:$4 sm:$0xff]   ;;  %414 = vmatprep.subr.bf16.mxu1 %v888_v7  ;;  %v1046_v49 = vmov 0  }
  0x3a   :  { %v892_v10 = vld [vmem:[#allocation5 + $0x1c] ss:$12 sps:$4 sm:$0xff]   ;;  %415 = vmatpush1.bf16.msra.mxu1 %v890_v8  ;;  %v894_v11 = vld [vmem:[#allocation5 + $0x18] ss:$12 sps:$4 sm:$0xff]   ;;  %v896_v12 = vld [vmem:[#allocation5 + $0x34] ss:$12 sps:$4 sm:$0xff]   ;;  %446 = vmatprep.mubr.bf16.mxu1 %v1046_v49 }
  0x3b   :  { %416 = vmatprep.subr.bf16.mxu1 %v892_v10  ;;  %v898_v13 = vld [vmem:[#allocation5 + $0x30] ss:$12 sps:$4 sm:$0xff]   ;;  %v900_v14 = vld [vmem:[#allocation5 + $0x4c] ss:$12 sps:$4 sm:$0xff]   ;;  %v902_v15 = vld [vmem:[#allocation5 + $0x48] ss:$12 sps:$4 sm:$0xff]  }
  0x3c   :  { %823 = vmatpush3.bf16.msra.mxu0 %v885_v2  ;;  %v904_v16 = vld [vmem:[#allocation5 + $0x64] ss:$12 sps:$4 sm:$0xff]   ;;  %v906_v17 = vld [vmem:[#allocation5 + $0x60] ss:$12 sps:$4 sm:$0xff]   ;;  %v908_v18 = vld [vmem:[#allocation5 + $0x7c] ss:$12 sps:$4 sm:$0xff]  }
  0x3d   :  { %874 = vmatprep.subr.msk.bf16.mxu0 %vm195_vm2, %v184_v5  ;;  %v910_v19 = vld [vmem:[#allocation5 + $0x78] ss:$12 sps:$4 sm:$0xff]   ;;  %v895_v38 = vld [vmem:[#allocation5 + $0x20] ss:$12 sps:$4 sm:$0xff]   ;;  %v903_v40 = vld [vmem:[#allocation5 + $0x50] ss:$12 sps:$4 sm:$0xff]  }
  0x3e   :  { %417 = vmatpush1.bf16.msra.mxu1 %v894_v11  ;;  %v77_v20 = vld [vmem:[#allocation2 + $0x10] sm:$0xff]  ;;  %v75_v21 = vld [vmem:[#allocation2] sm:$0xff]  ;;  %v899_v39 = vld [vmem:[#allocation5 + $0x38] ss:$12 sps:$4 sm:$0xff]   ;;  %v1145_v51 = vshrl.u32 %v185_v50, 7 }
  0x3f   :  { %825 = vmatmul.mubr.msk.bf16.vlgmr.msra.gmra.mrb[0].mxu0 %vm109_vm1, %v887_v4  ;;  %418 = vmatprep.subr.bf16.mxu1 %v896_v12  ;;  %v78_v23 = vld [vmem:[#allocation2 + $0x18] sm:$0xff]  ;;  %v76_v26 = vld [vmem:[#allocation2 + $0x8] sm:$0xff]  ;;  %v911_v42 = vld [vmem:[#allocation5 + $0x80] ss:$12 sps:$4 sm:$0xff]  }
  0x40   :  { %829 = vmatpush3.bf16.msra.mxu0 %v197_v6  ;;  %v907_v41 = vld [vmem:[#allocation5 + $0x68] ss:$12 sps:$4 sm:$0xff]   ;;  %v914_v44 = vld [vmem:[#allocation5 + $0x90] ss:$12 sps:$4 sm:$0xff]   ;;  %v915_v45 = vld [vmem:[#allocation5 + $0x98] ss:$12 sps:$4 sm:$0xff]  }
  0x41   :  { %834 = vmatprep.subr.bf16.mxu0 %v891_v9  ;;  %v912_v43 = vld [vmem:[#allocation5 + $0x94] ss:$12 sps:$4 sm:$0xff]   ;;  %v916_v46 = vld [vmem:[#allocation5 + $0xac] ss:$12 sps:$4 sm:$0xff]   ;;  %v919_v48 = vld [vmem:[#allocation5 + $0xb0] ss:$12 sps:$4 sm:$0xff]  }
  0x42   :  { %419 = vmatpush1.bf16.msra.mxu1 %v898_v13  ;;  %v918_v47 = vld [vmem:[#allocation5 + $0xa8] ss:$12 sps:$4 sm:$0xff]   ;;  %v187_v52 = vsub.s32 0, %v1145_v51  ;;  %v1151_v53 = vld [vmem:[%s1187_s4] sm:$0xff]  ;;  %v518_v13 = vsub.s32 1, %v1145_v51  ;;  %v590_v50 = vsub.s32 4, %v1145_v51 }
  0x43   :  { %420 = vmatprep.subr.bf16.mxu1 %v900_v14  ;;  %v920_v5 = vld [vmem:[#allocation7] sm:$0xff]   ;;  %v921_v6 = vld [vmem:[#allocation7 + $0x8] sm:$0xff]   ;;  %v922_v7 = vld [vmem:[#allocation7 + $0x10] sm:$0xff]   ;;  %v550_v14 = vsub.s32 2, %v1145_v51 }
  0x44   :  { %v188_v54 = vrot.slane %v1151_v53, %v187_v52  ;;  %v923_v8 = vld [vmem:[#allocation7 + $0x18] sm:$0xff]   ;;  %v925_v10 = vld [vmem:[#allocation7 + $0x28] sm:$0xff]   ;;  %v926_v11 = vld [vmem:[#allocation7 + $0x30] sm:$0xff]  }
  0x45   :  { %v927_v12 = vld [vmem:[#allocation7 + $0x38] sm:$0xff]  }
  0x46   :  { %421 = vmatpush1.bf16.msra.mxu1 %v902_v15  ;;  %v519_v15 = vrot.slane %v1151_v53, %v518_v13 }
  0x47   :  { %422 = vmatprep.subr.bf16.mxu1 %v904_v16 }
  0x4a   :  { %423 = vmatpush1.bf16.msra.mxu1 %v906_v17  ;;  %v551_v17 = vrot.slane %v1151_v53, %v550_v14 }
  0x4b   :  { %424 = vmatprep.subr.bf16.mxu1 %v908_v18 }
  0x4e   :  { %425 = vmatpush1.bf16.msra.mxu1 %v910_v19 }
  0x4f   :  { %426 = vmatprep.subr.bf16.mxu1 %v912_v43 }
  0x52   :  { %427 = vmatpush1.bf16.msra.mxu1 %v914_v44 }
  0x53   :  { %428 = vmatprep.subr.bf16.mxu1 %v916_v46 }
  0x56   :  { %429 = vmatpush1.bf16.msra.mxu1 %v918_v47 }
  0x57   :  { %854 = vmatprep.subr.bf16.mxu1 %v920_v5 }
 0x112   :  { %v826_v22 = vpop.f32.mrb[0].mxu0 }
 0x113   :  { %v167_v24 = vadd.f32 %v826_v22, %v77_v20  ;;  %v150_v25 = vpop.f32.mrb[1].mxu0 }
 0x114   :  { %v165_v27 = vadd.f32 %v150_v25, %v75_v21  ;;  %v827_v28 = vpop.f32.mrb[2].mxu0 }
 0x115   :  { %172 = vst.msk [vmem:[#allocation2 + $0x10] sm:$0xff] %vm70_vm0, %v167_v24  ;;  %v168_v29 = vadd.f32 %v827_v28, %v78_v23  ;;  %v153_v30 = vpop.f32.mrb[3].mxu0 }
 0x116   :  { %170 = vst.msk [vmem:[#allocation2] sm:$0xff] %vm70_vm0, %v165_v27  ;;  %v166_v31 = vadd.f32 %v153_v30, %v76_v26 }
 0x117   :  { %173 = vst.msk [vmem:[#allocation2 + $0x18] sm:$0xff] %vm70_vm0, %v168_v29 }
 0x118   :  { %171 = vst.msk [vmem:[#allocation2 + $0x8] sm:$0xff] %vm70_vm0, %v166_v31 }
 0x11c   :  { %v180_v36 = vld [vmem:[#allocation2 + $0x10] sm:$0xff] }
 0x11d   :  { %v178_v33 = vld [vmem:[#allocation2] sm:$0xff] }
 0x11e   :  { %v181_v32 = vld [vmem:[#allocation2 + $0x18] sm:$0xff] }
 0x11f   :  { %v179_v34 = vld [vmem:[#allocation2 + $0x8] sm:$0xff]  ;;  %v183_v37 = vpack.c.bf16 %v181_v32, %v180_v36 }
 0x120   :  { %v182_v35 = vpack.c.bf16 %v179_v34, %v178_v33 }
 0x122   :  { %830 = vmatprep.mubr.msk.bf16.mxu0 %vm70_vm0, %v182_v35 }
 0x123   :  { %831 = vmatmul.mubr.msk.bf16.vlgmr.msra.gmra.mrb[4].mxu0 %vm70_vm0, %v183_v37 }
 0x124   :  { %835 = vmatpush3.bf16.msra.mxu0 %v891_v9  ;;  %v924_v9 = vld [vmem:[#allocation7 + $0x20] sm:$0xff]  }
 0x125   :  { %836 = vmatprep.subr.bf16.mxu0 %v895_v38 }
 0x128   :  { %837 = vmatpush3.bf16.msra.mxu0 %v895_v38 }
 0x129   :  { %838 = vmatprep.subr.bf16.mxu0 %v899_v39 }
 0x12c   :  { %839 = vmatpush3.bf16.msra.mxu0 %v899_v39 }
 0x12d   :  { %840 = vmatprep.subr.bf16.mxu0 %v903_v40 }
 0x130   :  { %841 = vmatpush3.bf16.msra.mxu0 %v903_v40 }
 0x131   :  { %842 = vmatprep.subr.bf16.mxu0 %v907_v41 }
 0x134   :  { %843 = vmatpush3.bf16.msra.mxu0 %v907_v41 }
 0x135   :  { %844 = vmatprep.subr.bf16.mxu0 %v911_v42 }
 0x138   :  { %845 = vmatpush3.bf16.msra.mxu0 %v911_v42 }
 0x139   :  { %846 = vmatprep.subr.bf16.mxu0 %v915_v45 }
 0x13c   :  { %847 = vmatpush3.bf16.msra.mxu0 %v915_v45 }
 0x13d   :  { %848 = vmatprep.subr.bf16.mxu0 %v919_v48 }
 0x140   :  { %849 = vmatpush3.bf16.msra.mxu0 %v919_v48 }
 0x1f6   :  { %v832_v55 = vpop.f32.mrb[4].mxu0 }
 0x1f7   :  { %v242_v56 = vadd.f32 %v832_v55, %v188_v54  ;;  %v233_v57 = vpop.f32.mrb[5].mxu0 }
 0x1f8   :  { %v234_v58 = vadd.f32 %v233_v57, %v188_v54  ;;  %v833_v59 = vpop.f32.mrb[6].mxu0 }
 0x1f9   :  { %v245_v60 = vadd.f32 %v833_v59, %v188_v54  ;;  %v236_v61 = vpop.f32.mrb[7].mxu0  ;;  %v250_v63 = vmax.f32 %v242_v56, 0.0 }
 0x1fa   :  { %v237_v62 = vadd.f32 %v236_v61, %v188_v54  ;;  %v248_v1 = vmax.f32 %v234_v58, 0.0 }
 0x1fb   :  { %v251_v0 = vmax.f32 %v245_v60, 0.0  ;;  %v591_v60 = vrot.slane %v1151_v53, %v590_v50 }
 0x1fc   :  { %v249_v2 = vmax.f32 %v237_v62, 0.0 }
 0x1fd   :  { %v253_v3 = vpack.c.bf16 %v251_v0, %v250_v63 }
 0x1fe   :  { %v252_v4 = vpack.c.bf16 %v249_v2, %v248_v1 }
 0x200   :  { %447 = vmatmul.mubr.bf16.vlgmr.msra.gmra.mrb[0].mxu1 %v252_v4  ;;  %850 = vmatprep.mubr.bf16.mxu0 %v252_v4 }
 0x201   :  { %851 = vmatmul.mubr.bf16.vlgmr.msra.gmra.mrb[8].mxu0 %v253_v3  ;;  %456 = vmatprep.mubr.bf16.mxu1 %v1046_v49  ;;  %v582_v49 = vsub.s32 3, %v1145_v51 }
 0x202   :  { %855 = vmatpush3.bf16.msra.mxu1 %v920_v5 }
 0x203   :  { %856 = vmatprep.subr.bf16.mxu1 %v921_v6  ;;  %v583_v59 = vrot.slane %v1151_v53, %v582_v49 }
 0x206   :  { %857 = vmatpush3.bf16.msra.mxu1 %v921_v6 }
 0x207   :  { %858 = vmatprep.subr.bf16.mxu1 %v922_v7 }
 0x208   :  { %457 = vmatmul.mubr.bf16.gmra.mrb[4].mxu1 %v253_v3 }
 0x20a   :  { %859 = vmatpush3.bf16.msra.mxu1 %v922_v7 }
 0x20b   :  { %860 = vmatprep.subr.bf16.mxu1 %v923_v8 }
 0x20e   :  { %861 = vmatpush3.bf16.msra.mxu1 %v923_v8 }
 0x20f   :  { %862 = vmatprep.subr.bf16.mxu1 %v924_v9 }
 0x212   :  { %863 = vmatpush3.bf16.msra.mxu1 %v924_v9 }
 0x213   :  { %864 = vmatprep.subr.bf16.mxu1 %v925_v10 }
 0x216   :  { %865 = vmatpush3.bf16.msra.mxu1 %v925_v10 }
 0x217   :  { %866 = vmatprep.subr.bf16.mxu1 %v926_v11 }
 0x21a   :  { %867 = vmatpush3.bf16.msra.mxu1 %v926_v11 }
 0x21b   :  { %868 = vmatprep.subr.bf16.mxu1 %v927_v12 }
 0x21e   :  { %869 = vmatpush3.bf16.msra.mxu1 %v927_v12 }
 0x2d3   :  { %v448_v16 = vpop.f32.mrb[0].mxu1 }
 0x2d4   :  { %v520_v18 = vadd.f32 %v519_v15, %v448_v16  ;;  %v450_v19 = vpop.f32.mrb[1].mxu1  ;;  %v1158_v20 = vpop.f32.mrb[8].mxu0 }
 0x2d5   :  { %v452_v21 = vpop.f32.mrb[2].mxu1  ;;  %v501_v22 = vpop.f32.mrb[9].mxu0  ;;  %v552_v27 = vadd.f32 %v551_v17, %v450_v19  ;;  %v586_v10 = vadd.f32 %v1158_v20, %v583_v59 }
 0x2d6   :  { %v776_v23 = vmul.f32 -1.442695, %v520_v18  ;;  %v521_v24 = vadd.f32 %v519_v15, %v452_v21  ;;  %v454_v25 = vpop.f32.mrb[3].mxu1  ;;  %v1160_v26 = vpop.f32.mrb[10].mxu0  ;;  %v584_v1 = vadd.f32 %v583_v59, %v501_v22 }
 0x2d7   :  { %v504_v28 = vpop.f32.mrb[11].mxu0  ;;  %v553_v30 = vadd.f32 %v551_v17, %v454_v25  ;;  %v780_v31 = vmul.f32 -1.442695, %v552_v27  ;;  %v587_v14 = vadd.f32 %v1160_v26, %v583_v59 }
 0x2d8   :  { %928 = vpow2.f32 %v776_v23  ;;  %v777_v29 = vmul.f32 -1.442695, %v521_v24  ;;  %v585_v4 = vadd.f32 %v583_v59, %v504_v28 }
 0x2d9   :  { %v781_v35 = vmul.f32 -1.442695, %v553_v30 }
 0x2da   :  { %930 = vpow2.f32 %v777_v29 }
 0x2db   :  { %v458_v32 = vpop.f32.mrb[4].mxu1  ;;  %932 = vpow2.f32 %v780_v31 }
 0x2dc   :  { %v522_v33 = vadd.f32 %v519_v15, %v458_v32  ;;  %v460_v34 = vpop.f32.mrb[5].mxu1 }
 0x2dd   :  { %v462_v36 = vpop.f32.mrb[6].mxu1  ;;  %v554_v38 = vadd.f32 %v551_v17, %v460_v34 }
 0x2de   :  { %v778_v37 = vmul.f32 -1.442695, %v522_v33  ;;  %v523_v39 = vadd.f32 %v519_v15, %v462_v36  ;;  %v464_v40 = vpop.f32.mrb[7].mxu1 }
 0x2df   :  { %v555_v42 = vadd.f32 %v551_v17, %v464_v40  ;;  %v782_v44 = vmul.f32 -1.442695, %v554_v38 }
 0x2e0   :  { %934 = vpow2.f32 %v778_v37  ;;  %v779_v41 = vmul.f32 -1.442695, %v523_v39 }
 0x2e1   :  { %936 = vpow2.f32 %v781_v35  ;;  %v783_v48 = vmul.f32 -1.442695, %v555_v42  ;;  %v784_v35 = vld [vmem:[%s1189_s6] ss:$0 sm:$0xff] }
 0x2e2   :  { %v929_v43 = vpop.eup %928  ;;  %938 = vpow2.f32 %v779_v41 }
 0x2e3   :  { %v536_v45 = vadd.f32 1.0, %v929_v43 }
 0x2e4   :  { %v931_v46 = vpop.eup %930 }
 0x2e5   :  { %940 = vrcp.f32 %v536_v45  ;;  %v537_v47 = vadd.f32 1.0, %v931_v46  ;;  %v933_v52 = vpop.eup %932 }
 0x2e6   :  { %942 = vpow2.f32 %v782_v44  ;;  %v568_v58 = vadd.f32 1.0, %v933_v52 }
 0x2e7   :  { %944 = vrcp.f32 %v537_v47 }
 0x2e8   :  { %946 = vpow2.f32 %v783_v48 }
 0x2ea   :  { %v935_v54 = vpop.eup %934 }
 0x2eb   :  { %v937_v55 = vpop.eup %936  ;;  %v538_v56 = vadd.f32 1.0, %v935_v54 }
 0x2ec   :  { %v939_v57 = vpop.eup %938  ;;  %v569_v62 = vadd.f32 1.0, %v937_v55 }
 0x2ed   :  { %948 = vrcp.f32 %v538_v56  ;;  %v539_v61 = vadd.f32 1.0, %v939_v57 }
 0x2ef   :  { %v941_v63 = vpop.eup %940  ;;  %950 = vrcp.f32 %v539_v61 }
 0x2f0   :  { %v943_v0 = vpop.eup %942  ;;  %952 = vrcp.f32 %v568_v58  ;;  %v592_v51 = vmul.f32 %v941_v63, %v591_v60 }
 0x2f1   :  { %v945_v2 = vpop.eup %944  ;;  %954 = vrcp.f32 %v569_v62  ;;  %v570_v8 = vadd.f32 1.0, %v943_v0 }
 0x2f2   :  { %v596_v3 = vadd.f32 %v592_v51, %v584_v1  ;;  %v593_v5 = vmul.f32 %v945_v2, %v591_v60  ;;  %v947_v6 = vpop.eup %946 }
 0x2f3   :  { %v571_v53 = vadd.f32 1.0, %v947_v6 }
 0x2f4   :  { %956 = vtanh.f32 %v596_v3  ;;  %v597_v7 = vadd.f32 %v593_v5, %v585_v4 }
 0x2f6   :  { %958 = vtanh.f32 %v597_v7 }
 0x2f7   :  { %v949_v9 = vpop.eup %948  ;;  %960 = vrcp.f32 %v570_v8 }
 0x2f8   :  { %v594_v11 = vmul.f32 %v949_v9, %v591_v60  ;;  %962 = vrcp.f32 %v571_v53 }
 0x2f9   :  { %v951_v12 = vpop.eup %950 }
 0x2fa   :  { %v953_v13 = vpop.eup %952  ;;  %v598_v15 = vadd.f32 %v594_v11, %v586_v10  ;;  %v595_v16 = vmul.f32 %v951_v12, %v591_v60 }
 0x2fb   :  { %v955_v17 = vpop.eup %954  ;;  %v604_v19 = vsub.f32 1.0, %v953_v13 }
 0x2fc   :  { %964 = vtanh.f32 %v598_v15  ;;  %v599_v18 = vadd.f32 %v595_v16, %v587_v14  ;;  %v605_v22 = vsub.f32 1.0, %v955_v17 }
 0x2fe   :  { %v957_v21 = vpop.eup %956  ;;  %966 = vtanh.f32 %v599_v18 }
 0x2ff   :  { %v608_v23 = vmul.f32 %v957_v21, %v604_v19 }
 0x300   :  { %v959_v24 = vpop.eup %958 }
 0x301   :  { %v609_v25 = vmul.f32 %v959_v24, %v605_v22  ;;  %v961_v20 = vpop.eup %960 }
 0x302   :  { %v963_v28 = vpop.eup %962  ;;  %v606_v29 = vsub.f32 1.0, %v961_v20 }
 0x303   :  { %v612_v27 = vpack.c.bf16 %v609_v25, %v608_v23  ;;  %v607_v31 = vsub.f32 1.0, %v963_v28 }
 0x305   :  { %870 = vmatprep.mubr.bf16.mxu1 %v612_v27 }
 0x306   :  { %v965_v30 = vpop.eup %964 }
 0x307   :  { %v610_v26 = vmul.f32 %v965_v30, %v606_v29 }
 0x308   :  { %v967_v32 = vpop.eup %966 }
 0x309   :  { %v611_v33 = vmul.f32 %v967_v32, %v607_v31 }
 0x30b   :  { %v613_v34 = vpack.c.bf16 %v611_v33, %v610_v26 }
 0x30d   :  { %871 = vmatmul.mubr.bf16.vlgmr.msra.gmra.mrb[8].mxu1 %v613_v34 }
 0x3e0   :  { %v872_v36 = vpop.f32.mrb[8].mxu1 }
 0x3e1   :  { %v728_v37 = vadd.f32 %v872_v36, %v784_v35  ;;  %v719_v38 = vpop.f32.mrb[9].mxu1 }
 0x3e2   :  { %v720_v39 = vadd.f32 %v784_v35, %v719_v38  ;;  %v873_v40 = vpop.f32.mrb[10].mxu1 }
 0x3e3   :  { %736 = vst [vmem:[%s1190_s7 + $0x10] sm:$0xff] %v728_v37  ;;  %v731_v41 = vadd.f32 %v873_v40, %v784_v35  ;;  %v722_v42 = vpop.f32.mrb[11].mxu1 }
 0x3e4   :  { %734 = vst [vmem:[%s1190_s7] sm:$0xff] %v720_v39  ;;  %v723_v43 = vadd.f32 %v784_v35, %v722_v42 }
 0x3e5   :  { %737 = vst [vmem:[%s1190_s7 + $0x18] sm:$0xff] %v731_v41 }
 0x3e6   :  { %735 = vst [vmem:[%s1190_s7 + $0x8] sm:$0xff] %v723_v43 }
 0x3e7   :  { %742 = vsyncpa [#allocation4], 1 }
 0x3e8   :  { %743 = vsyncpa [#allocation6], 1 }

</bundles_post_ra>
